<compile_context>
chip_gen: v7x
topology: tpu7x:2x2x1
jax: 0.10.0
libtpu: 0.0.40
codegen_flags: <defaults>
</compile_context>

<pallas_src>
import numpy as np
import jax
import jax.numpy as jnp
from jax import lax
from jax.experimental import pallas as pl
from jax.experimental.pallas import tpu as pltpu

# ---------------------------------------------------------------------------
# Geometry constants (from Network.__init__)
# ---------------------------------------------------------------------------
C_IN, H, W = 3, 6, 7
KH = KW = 3
OH, OW = H - KH + 1, W - KW + 1        # 4, 5
N_POS = OH * OW                        # 20 conv output positions
C_OUT = 27                             # conv output channels
K_PATCH = C_IN * KH * KW               # 27 patch elements
N_IN = C_IN * H * W                    # 126 flattened board
N_CONV = N_POS * C_OUT                 # 540 flattened conv output
N_HID = 100

# Lane-aligned (padded) sizes used inside the kernel.
N_CONV_P = 640                         # 5 * 128
N_HID_P = 128                          # 1 * 128
N_A = N_HID_P + N_CONV_P               # 768: fused first-matmul output width


def _build_patch_index():
    """Flat source index for each (position-major) im2col patch element."""
    idx = np.zeros((N_POS * K_PATCH,), np.int32)
    m = 0
    for p in range(N_POS):
        oh, ow = divmod(p, OW)
        for ci in range(C_IN):
            for kh in range(KH):
                for kw in range(KW):
                    idx[m] = ci * H * W + (oh + kh) * W + (ow + kw)
                    m += 1
    return jnp.asarray(idx)


_PATCH_IDX = _build_patch_index()      # (540,) constant


# ---------------------------------------------------------------------------
# One-time parameter preparation (hoisted out of the forward path)
# ---------------------------------------------------------------------------
def prepare_params(params):
    conv_w, conv_b, fc1_w, fc1_b, fc2_w, fc2_b = params

    # conv weight as (patch_elem k, out_ch c), matching OIHW reshape.
    wm = conv_w.reshape(C_OUT, K_PATCH).T                     # (27, 27)
    # Block-diagonal (540, 540): one copy of wm per output position.
    w_block = jnp.kron(jnp.eye(N_POS, dtype=jnp.float32), wm)
    # Dense conv-as-matmul matrix: row = flat board index, col = p*27 + c.
    # Exact scatter-add (no within-column index collisions).
    wc_dense = jnp.zeros((N_IN, N_CONV), jnp.float32).at[_PATCH_IDX].add(w_block)
    bc_row = jnp.tile(conv_b, N_POS).reshape(1, N_CONV)       # bias at col p*27+c

    # fc1 split: first 126 columns act on flatten(x), last 540 act on
    # flatten(conv) in torch's channel-major order (c*20 + p).
    w1x = fc1_w[:, :N_IN].T                                   # (126, 100)
    w1c = (fc1_w[:, N_IN:]                                    # (100, 540) cols c*20+p
           .reshape(N_HID, C_OUT, N_POS)                      # [j, c, p]
           .transpose(2, 1, 0)                                # [p, c, j]
           .reshape(N_CONV, N_HID))                           # row index p*27+c

    # Lane-align everything with zero padding (exact: relu(0)=0, zero rows/
    # cols contribute nothing downstream).
    wc_pad = jnp.pad(wc_dense, ((0, 0), (0, N_CONV_P - N_CONV)))   # (126, 640)
    bc_pad = jnp.pad(bc_row, ((0, 0), (0, N_CONV_P - N_CONV)))     # (1, 640)
    w1x_pad = jnp.pad(w1x, ((0, 0), (0, N_HID_P - N_HID)))         # (126, 128)

    # Fused first matmul: one (126, 768) matrix producing [fc1_x_part | conv].
    wa = jnp.concatenate([w1x_pad, wc_pad], axis=1)                # (126, 768)

    w1c_pad = jnp.pad(w1c, ((0, N_CONV_P - N_CONV),
                            (0, N_HID_P - N_HID)))                 # (640, 128)
    b1_pad = jnp.pad(fc1_b.reshape(1, N_HID),
                     ((0, 0), (0, N_HID_P - N_HID)))               # (1, 128)
    w2_pad = jnp.pad(fc2_w.reshape(1, N_HID),
                     ((0, 0), (0, N_HID_P - N_HID)))               # (1, 128)
    b2 = fc2_b.reshape(1, 1)                                       # (1, 1)
    return (wa, bc_pad, w1c_pad, b1_pad, w2_pad, b2)


# ---------------------------------------------------------------------------
# Fused Pallas kernel: [fc1_x | conv] matmul -> ReLU -> fc1_conv matmul ->
# ReLU -> fc2, all resident in VMEM/vregs.  Works for any row count M.
# ---------------------------------------------------------------------------
def fused_kernel(x_ref, wa_ref, bc_ref, w1c_ref, b1_ref, w2_ref, b2_ref,
                 o_ref):
    x = x_ref[...]                                                   # (M, 126)
    # One MXU pass yields both fc1's x-contribution and conv pre-activation.
    y = jnp.dot(x, wa_ref[...], preferred_element_type=jnp.float32)  # (M, 768)
    hx = y[:, :N_HID_P]                                              # (M, 128)
    conv = jnp.maximum(y[:, N_HID_P:] + bc_ref[...], 0.0)            # (M, 640)
    h = hx + jnp.dot(conv, w1c_ref[...], preferred_element_type=jnp.float32)
    h = jnp.maximum(h + b1_ref[...], 0.0)                            # (M, 128)
    # fc2: 128 -> 1 as mul + keepdims reduce (padded cols are exact zeros).
    o_ref[...] = jnp.sum(h * w2_ref[...], axis=-1, keepdims=True) + b2_ref[...]


def _vmem_spec():
    return pl.BlockSpec(memory_space=pltpu.MemorySpace.VMEM)


def _full_spec(shape):
    nd = len(shape)
    return pl.BlockSpec(shape, lambda i, _nd=nd: (0,) * _nd)


# ---------------------------------------------------------------------------
# Wrappers
# ---------------------------------------------------------------------------
def network_forward(x, prepped):
    """x: (3, 6, 7) float32 -> (1,), matching the PyTorch module."""
    wa, bc, w1c, b1, w2, b2 = prepped
    x_row = x.reshape(1, N_IN)                       # free metadata reshape
    out = pl.pallas_call(
        fused_kernel,
        out_shape=jax.ShapeDtypeStruct((1, 1), jnp.float32),
        in_specs=[_vmem_spec()] * 7,
        out_specs=_vmem_spec(),
    )(x_row, wa, bc, w1c, b1, w2, b2)
    return out.reshape(1)


def network_forward_batched(xs, prepped, tile=128):
    """xs: (B, 3, 6, 7) -> (B, 1). Batch tiled over a 'parallel' grid axis."""
    wa, bc, w1c, b1, w2, b2 = prepped
    B = xs.shape[0]
    x_rows = xs.reshape(B, N_IN)
    tm = min(tile, B)
    bp = ((B + tm - 1) // tm) * tm
    if bp != B:
        x_rows = jnp.pad(x_rows, ((0, bp - B), (0, 0)))
    out = pl.pallas_call(
        fused_kernel,
        out_shape=jax.ShapeDtypeStruct((bp, 1), jnp.float32),
        grid=(bp // tm,),
        in_specs=[
            pl.BlockSpec((tm, N_IN), lambda i: (i, 0)),
            _full_spec((N_IN, N_A)),
            _full_spec((1, N_CONV_P)),
            _full_spec((N_CONV_P, N_HID_P)),
            _full_spec((1, N_HID_P)),
            _full_spec((1, N_HID_P)),
            _full_spec((1, 1)),
        ],
        out_specs=pl.BlockSpec((tm, 1), lambda i: (i, 0)),
        compiler_params=pltpu.CompilerParams(
            dimension_semantics=("parallel",)),     # shards across v7x's 2 TCs
    )(x_rows, wa, bc, w1c, b1, w2, b2)
    return out[:B]


# ---------------------------------------------------------------------------
# Pure-JAX reference (mirrors the PyTorch forward exactly)
# ---------------------------------------------------------------------------
def reference_forward(x, params):
    conv_w, conv_b, fc1_w, fc1_b, fc2_w, fc2_b = params
    hi = lax.Precision.HIGHEST
    y = lax.conv_general_dilated(
        x[None], conv_w, window_strides=(1, 1), padding="VALID",
        dimension_numbers=("NCHW", "OIHW", "NCHW"),
        precision=hi)[0] + conv_b[:, None, None]
    y = jnp.maximum(y, 0.0)
    feat = jnp.concatenate([x.reshape(-1), y.reshape(-1)])
    h = jnp.maximum(jnp.dot(feat, fc1_w.T, precision=hi) + fc1_b, 0.0)
    return jnp.dot(h, fc2_w.T, precision=hi) + fc2_b


# ---------------------------------------------------------------------------
# Deterministic parameter init (shapes per Network.__init__)
# ---------------------------------------------------------------------------
def init_params(key):
    ks = jax.random.split(key, 6)

    def u(k, shape, fan_in):
        bound = 1.0 / jnp.sqrt(jnp.float32(fan_in))
        return jax.random.uniform(k, shape, jnp.float32, -bound, bound)

    conv_w = u(ks[0], (27, 3, 3, 3), 3 * 3 * 3)
    conv_b = u(ks[1], (27,), 3 * 3 * 3)
    fc1_w = u(ks[2], (100, 666), 666)        # 4*5*27 + 6*7*3 = 666
    fc1_b = u(ks[3], (100,), 666)
    fc2_w = u(ks[4], (1, 100), 100)
    fc2_b = u(ks[5], (1,), 100)
    return (conv_w, conv_b, fc1_w, fc1_b, fc2_w, fc2_b)


if __name__ == "__main__":
    key = jax.random.PRNGKey(0)
    k_params, k_x, k_xb = jax.random.split(key, 3)
    params = init_params(k_params)
    prepped = prepare_params(params)         # one-time weight prep (hoisted)

    # Single board, matching the PyTorch module's unbatched forward.
    x = jax.random.normal(k_x, (3, 6, 7), jnp.float32)
    out = jax.block_until_ready(jax.jit(network_forward)(x, prepped))
    ref = reference_forward(x, params)
    if not jnp.allclose(out, ref, rtol=5e-4, atol=5e-4):
        raise AssertionError(f"single-sample mismatch: kernel={out}, ref={ref}")

    # Batched boards (e.g. MCTS rollouts): tiled grid, parallel batch axis.
    B = 256
    xs = jax.random.normal(k_xb, (B, 3, 6, 7), jnp.float32)
    outs = jax.block_until_ready(jax.jit(network_forward_batched)(xs, prepped))
    refs = jax.vmap(reference_forward, in_axes=(0, None))(xs, params)
    if not jnp.allclose(outs.reshape(-1), refs.reshape(-1), rtol=5e-4, atol=5e-4):
        raise AssertionError("batched mismatch")

    print("KERNEL_OK")
</pallas_src>

<mosaic_0001>
module attributes {stable_mosaic.version = 11 : i64} {
  func.func @fused_kernel(%arg0: memref<1x126xf32, #tpu.memory_space<vmem>>, %arg1: memref<126x768xf32, #tpu.memory_space<vmem>>, %arg2: memref<1x640xf32, #tpu.memory_space<vmem>>, %arg3: memref<640x128xf32, #tpu.memory_space<vmem>>, %arg4: memref<1x128xf32, #tpu.memory_space<vmem>>, %arg5: memref<1x128xf32, #tpu.memory_space<vmem>>, %arg6: memref<1x1xf32, #tpu.memory_space<vmem>>, %arg7: memref<1x1xf32, #tpu.memory_space<vmem>>) attributes {dimension_semantics = [], scalar_prefetch = 0 : i64, scratch_operands = 0 : i64, tpu.core_type = #tpu.core_type<tc>} {
    %c0 = arith.constant 0 : index
    %c0_0 = arith.constant 0 : index
    %0 = vector.load %arg0[%c0, %c0_0] : memref<1x126xf32, #tpu.memory_space<vmem>>, vector<1x126xf32>
    %c0_1 = arith.constant 0 : index
    %c0_2 = arith.constant 0 : index
    %1 = vector.load %arg1[%c0_1, %c0_2] : memref<126x768xf32, #tpu.memory_space<vmem>>, vector<126x768xf32>
    %cst = arith.constant dense<0.000000e+00> : vector<1x768xf32>
    %2 = tpu.matmul %0, %1, %cst {dimension_numbers = #tpu.dot_dimension_numbers<[1], [0], [0], [1], [0, 0, 1, 1], [], []>} : vector<1x126xf32>, vector<126x768xf32>, vector<1x768xf32> -> vector<1x768xf32>
    %3 = vector.extract_strided_slice %2 {offsets = [0, 0], sizes = [1, 128], strides = [1, 1]} : vector<1x768xf32> to vector<1x128xf32>
    %4 = vector.extract_strided_slice %2 {offsets = [0, 128], sizes = [1, 640], strides = [1, 1]} : vector<1x768xf32> to vector<1x640xf32>
    %c0_3 = arith.constant 0 : index
    %c0_4 = arith.constant 0 : index
    %5 = vector.load %arg2[%c0_3, %c0_4] : memref<1x640xf32, #tpu.memory_space<vmem>>, vector<1x640xf32>
    %6 = arith.addf %4, %5 : vector<1x640xf32>
    %cst_5 = arith.constant 0.000000e+00 : f32
    %7 = vector.broadcast %cst_5 : f32 to vector<1x640xf32>
    %8 = arith.maximumf %6, %7 : vector<1x640xf32>
    %c0_6 = arith.constant 0 : index
    %c0_7 = arith.constant 0 : index
    %9 = vector.load %arg3[%c0_6, %c0_7] : memref<640x128xf32, #tpu.memory_space<vmem>>, vector<640x128xf32>
    %cst_8 = arith.constant dense<0.000000e+00> : vector<1x128xf32>
    %10 = tpu.matmul %8, %9, %cst_8 {dimension_numbers = #tpu.dot_dimension_numbers<[1], [0], [0], [1], [0, 0, 1, 1], [], []>} : vector<1x640xf32>, vector<640x128xf32>, vector<1x128xf32> -> vector<1x128xf32>
    %11 = arith.addf %3, %10 : vector<1x128xf32>
    %c0_9 = arith.constant 0 : index
    %c0_10 = arith.constant 0 : index
    %12 = vector.load %arg4[%c0_9, %c0_10] : memref<1x128xf32, #tpu.memory_space<vmem>>, vector<1x128xf32>
    %13 = arith.addf %11, %12 : vector<1x128xf32>
    %cst_11 = arith.constant 0.000000e+00 : f32
    %14 = vector.broadcast %cst_11 : f32 to vector<1x128xf32>
    %15 = arith.maximumf %13, %14 : vector<1x128xf32>
    %c0_12 = arith.constant 0 : index
    %c0_13 = arith.constant 0 : index
    %16 = vector.load %arg5[%c0_12, %c0_13] : memref<1x128xf32, #tpu.memory_space<vmem>>, vector<1x128xf32>
    %17 = arith.mulf %15, %16 : vector<1x128xf32>
    %cst_14 = arith.constant dense<0.000000e+00> : vector<1xf32>
    %18 = vector.multi_reduction <add>, %17, %cst_14 [1] : vector<1x128xf32> to vector<1xf32>
    %19 = vector.shape_cast %18 : vector<1xf32> to vector<1x1xf32>
    %c0_15 = arith.constant 0 : index
    %c0_16 = arith.constant 0 : index
    %20 = vector.load %arg6[%c0_15, %c0_16] : memref<1x1xf32, #tpu.memory_space<vmem>>, vector<1x1xf32>
    %21 = arith.addf %19, %20 : vector<1x1xf32>
    %c0_17 = arith.constant 0 : index
    %c0_18 = arith.constant 0 : index
    %22 = vector.load %arg7[%c0_17, %c0_18] : memref<1x1xf32, #tpu.memory_space<vmem>>, vector<1x1xf32>
    tpu.vector_store %arg7[%c0_17, %c0_18], %21 {strides = array<i32>} : memref<1x1xf32, #tpu.memory_space<vmem>>, vector<1x1xf32>,
    return
  }
}

</mosaic_0001>

<bundles_post_ra>
// kernel: network_forward.1
= control target key start
LH: loop header
LB: loop body
LE: loop exit
PB: predicated region body
PF: predicated region fallthrough
CT: control target
= control target key end

     0   :  { %s1292_s0 = inlined_call_operand.vmem [shape: f32[1,126], index: 0, kind: input, shape index: {}]   ;;  %s1293_s1 = inlined_call_operand.hbm [shape: f32[126,768], index: 1, kind: input, shape index: {}]   ;;  %s1294_s2 = inlined_call_operand.vmem [shape: f32[1,640], index: 2, kind: input, shape index: {}]   ;;  %s1295_s3 = inlined_call_operand.hbm [shape: f32[640,128], index: 3, kind: input, shape index: {}]   ;;  %s1296_s4 = inlined_call_operand.vmem [shape: f32[1,128], index: 4, kind: input, shape index: {}]   ;;  %s1297_s5 = inlined_call_operand.vmem [shape: f32[1,128], index: 5, kind: input, shape index: {}]   ;;  %s1298_s6 = inlined_call_operand.<no memory space> [shape: f32[1,1], index: 6, kind: input, shape index: {}]   ;;  %s1299_s7 = inlined_call_operand.hbm [shape: f32[1,1], index: 7, kind: output, shape index: {}]  }
   0x1   :  { %v12_v0 = vstv %s1298_s6 }
   0x2   :  { %13 = vst [vmem:[#allocation2] sm:$0x1] %v12_v0 }
   0x3   :  { %14 = vsyncpa [#allocation4], 0 }
   0x4   :  { %15 = vsyncpa [#allocation7], 0 }
   0x5   :  { %16 = vsyncpa [#allocation5], 0  ;;  %s1151_s26 = smov [#allocation3]   ;;  %s1079_s30 = scalar_lea.hbm %s1293_s1, 12288 }
   0x6   :  { %s24_s27 = sshll.u32 %s1151_s26, 4  ;;  %p1080_p0 = scmp.ne.s32.totalorder %s1293_s1, %s1079_s30  ;;  %s25_s27 = int_to_ptr.vmem [resolvable:$true] %s24_s27 }
   0x7   :  { %p1083_p1 = scmp.lt.u32.totalorder %s1079_s30, %s1293_s1 }
   0x9   :  { %p1085_p2 = pnand %p1083_p1, %p1080_p0 }
   0xb   :  { %1088 = shalt.err (!%p1085_p2)
}
   0xc   :  { %s1089_s6 = scalar_lea.vmem %s25_s27, 12288  ;;  %p1094_p4 = scmp.lt.s32.totalorder %s25_s27, %s25_s27 }
   0xd   :  { %p1090_p3 = scmp.ne.s32.totalorder %s25_s27, %s1089_s6  ;;  %p1095_p5 = scmp.lt.s32.totalorder %s1089_s6, %s1089_s6 }
   0xf   :  { %p1096_p6 = por %p1095_p5, %p1094_p4 }
  0x11   :  { %p1097_p7 = pnand %p1096_p6, %p1090_p3 }
  0x13   :  { %1100 = shalt.err (!%p1097_p7)
}
  0x14   :  { %s1152_s12 = smov 768   ;;  %s1153_s13 = smov 48  }
  0x15   :  { %30 = dma.hbm_to_vmem [thread:$0]  %s1293_s1, 12288, %s25_s27, [#allocation4], %s1152_s12, %s1152_s12, %s1153_s13  }
  0x16   :  { %s1154_s16 = smov [#allocation6]   ;;  %s1101_s20 = scalar_lea.hbm %s1295_s3, 10240 }
  0x17   :  { %s38_s17 = sshll.u32 %s1154_s16, 4  ;;  %p1102_p8 = scmp.ne.s32.totalorder %s1295_s3, %s1101_s20  ;;  %s39_s17 = int_to_ptr.vmem [resolvable:$true] %s38_s17 }
  0x18   :  { %p1105_p9 = scmp.lt.u32.totalorder %s1101_s20, %s1295_s3 }
  0x1a   :  { %p1107_p10 = pnand %p1105_p9, %p1102_p8 }
  0x1c   :  { %1110 = shalt.err (!%p1107_p10)
}
  0x1d   :  { %s1111_s25 = scalar_lea.vmem %s39_s17, 10240  ;;  %p1116_p12 = scmp.lt.s32.totalorder %s39_s17, %s39_s17 }
  0x1e   :  { %p1112_p11 = scmp.ne.s32.totalorder %s39_s17, %s1111_s25  ;;  %p1117_p13 = scmp.lt.s32.totalorder %s1111_s25, %s1111_s25 }
  0x20   :  { %p1118_p0 = por %p1117_p13, %p1116_p12 }
  0x22   :  { %p1119_p1 = pnand %p1118_p0, %p1112_p11 }
  0x24   :  { %1122 = shalt.err (!%p1119_p1)
}
  0x25   :  { %s1155_s1 = smov 128   ;;  %s1156_s26 = smov 8  }
  0x26   :  { %44 = dma.hbm_to_vmem [thread:$0]  %s1295_s3, 10240, %s39_s17, [#allocation7], %s1155_s1, %s1155_s1, %s1156_s26  }
  0x27   :  { %1145 = dma.done.wait [#allocation4], 12288  }
  0x28   :  { %1146 = vsyncadd [#allocation4], 4294955008 }
  0x29   :  { %1147 = dma.done.wait [#allocation7], 10240  }
  0x2a   :  { %1148 = vsyncadd [#allocation7], 4294957056  ;;  %v1157_v1 = vmov 0.0   ;;  %v59_v2 = vld [vmem:[#allocation3 + $0x8] sm:$0xff]  ;;  %v65_v3 = vld [vmem:[#allocation3 + $0x38] sm:$0xff]  ;;  %vm158_vm0 = vcmask 1045504  }
  0x2b   :  { %241 = vmatprep.mubr.f32.mxu0 %v1157_v1  ;;  %312 = vmatprep.mubr.f32.mxu1 %v1157_v1  ;;  %v61_v4 = vld [vmem:[#allocation3 + $0x18] sm:$0xff]  ;;  %v878_v5 = vpack.c.bf16 %v65_v3, %v59_v2  ;;  %v67_v6 = vld [vmem:[#allocation3 + $0x48] sm:$0xff]  ;;  %v58_v7 = vld [vmem:[#allocation3] sm:$0xff]  ;;  %vm1158_vm1 = vmmov 1   ;;  %vm154_vm3 = vcmask 1031168   ;;  %vm1160_vm4 = vmmov 0  }
  0x2c   :  { %v64_v8 = vld [vmem:[#allocation3 + $0x30] sm:$0xff]  ;;  %v912_v9 = vpack.c.bf16 %v67_v6, %v61_v4  ;;  %v66_v12 = vld [vmem:[#allocation3 + $0x40] sm:$0xff]  ;;  %v71_v13 = vld [vmem:[#allocation3 + $0x68] sm:$0xff]  ;;  %vm723_vm5 = vcmask 1040384   ;;  %s1161_s11 = smov [#allocation8]   ;;  %vm729_vm6 = vcmask 0  }
  0x2d   :  { %v880_v10 = vpack.c.bf16 %v64_v8, %v58_v7  ;;  %v60_v11 = vld [vmem:[#allocation3 + $0x10] sm:$0xff]  ;;  %879 = vmatprep.subr.bf16.mxu0 %v878_v5  ;;  %v77_v15 = vld [vmem:[#allocation3 + $0x98] sm:$0xff]  ;;  %v79_v17 = vld [vmem:[#allocation3 + $0xa8] sm:$0xff]  ;;  %s737_s6 = sshll.u32 %s1161_s11, 4  ;;  %s738_s6 = int_to_ptr.vmem [resolvable:$true] %s737_s6 }
  0x2e   :  { %v914_v14 = vpack.c.bf16 %v66_v12, %v60_v11  ;;  %v73_v16 = vld [vmem:[#allocation3 + $0x78] sm:$0xff]  ;;  %913 = vmatprep.subr.bf16.mxu1 %v912_v9  ;;  %v882_v18 = vpack.c.bf16 %v77_v15, %v71_v13  ;;  %v70_v20 = vld [vmem:[#allocation3 + $0x60] sm:$0xff]  ;;  %v76_v21 = vld [vmem:[#allocation3 + $0x90] sm:$0xff]  ;;  %s1127_s12 = scalar_lea.vmem %s738_s6, 32  ;;  %p1128_p3 = scmp.lt.s32.totalorder %s738_s6, %s738_s6 }
  0x2f   :  { %881 = vmatpush1.bf16.msra.mxu0 %v880_v10  ;;  %v916_v19 = vpack.c.bf16 %v79_v17, %v73_v16  ;;  %v72_v22 = vld [vmem:[#allocation3 + $0x70] sm:$0xff]  ;;  %v884_v23 = vpack.c.bf16 %v76_v21, %v70_v20  ;;  %v78_v24 = vld [vmem:[#allocation3 + $0xa0] sm:$0xff]  ;;  %v83_v25 = vld [vmem:[#allocation3 + $0xc8] sm:$0xff] }
  0x30   :  { %915 = vmatpush1.bf16.msra.mxu1 %v914_v14  ;;  %v89_v26 = vld [vmem:[#allocation3 + $0xf8] sm:$0xff]  ;;  %883 = vmatprep.subr.bf16.mxu0 %v882_v18  ;;  %v918_v27 = vpack.c.bf16 %v78_v24, %v72_v22  ;;  %v91_v30 = vld [vmem:[#allocation3 + $0x108] sm:$0xff]  ;;  %v82_v31 = vld [vmem:[#allocation3 + $0xc0] sm:$0xff] }
  0x31   :  { %917 = vmatprep.subr.bf16.mxu1 %v916_v19  ;;  %v886_v28 = vpack.c.bf16 %v89_v26, %v83_v25  ;;  %v85_v29 = vld [vmem:[#allocation3 + $0xd8] sm:$0xff]  ;;  %v88_v33 = vld [vmem:[#allocation3 + $0xf0] sm:$0xff]  ;;  %v90_v35 = vld [vmem:[#allocation3 + $0x100] sm:$0xff]  ;;  %v1159_v26 = vmov 0.0|0.0  }
  0x32   :  { %v920_v32 = vpack.c.bf16 %v91_v30, %v85_v29  ;;  %v84_v34 = vld [vmem:[#allocation3 + $0xd0] sm:$0xff]  ;;  %v888_v36 = vpack.c.bf16 %v88_v33, %v82_v31  ;;  %v95_v37 = vld [vmem:[#allocation3 + $0x128] sm:$0xff]  ;;  %v101_v38 = vld [vmem:[#allocation3 + $0x158] sm:$0xff] }
  0x33   :  { %885 = vmatpush1.bf16.msra.mxu0 %v884_v23  ;;  %v97_v39 = vld [vmem:[#allocation3 + $0x138] sm:$0xff]  ;;  %v922_v40 = vpack.c.bf16 %v90_v35, %v84_v34  ;;  %v890_v41 = vpack.c.bf16 %v101_v38, %v95_v37  ;;  %v103_v42 = vld [vmem:[#allocation3 + $0x168] sm:$0xff]  ;;  %v94_v43 = vld [vmem:[#allocation3 + $0x120] sm:$0xff] }
  0x34   :  { %919 = vmatpush1.bf16.msra.mxu1 %v918_v27  ;;  %887 = vmatprep.subr.bf16.mxu0 %v886_v28  ;;  %v100_v44 = vld [vmem:[#allocation3 + $0x150] sm:$0xff]  ;;  %v924_v45 = vpack.c.bf16 %v103_v42, %v97_v39  ;;  %v102_v47 = vld [vmem:[#allocation3 + $0x160] sm:$0xff]  ;;  %v107_v48 = vld [vmem:[#allocation3 + $0x188] sm:$0xff] }
  0x35   :  { %921 = vmatprep.subr.bf16.mxu1 %v920_v32  ;;  %v96_v46 = vld [vmem:[#allocation3 + $0x130] sm:$0xff]  ;;  %v113_v49 = vld [vmem:[#allocation3 + $0x1b8] sm:$0xff]  ;;  %v115_v51 = vld [vmem:[#allocation3 + $0x1c8] sm:$0xff]  ;;  %v892_v52 = vpack.c.bf16 %v100_v44, %v94_v43 }
  0x36   :  { %v109_v50 = vld [vmem:[#allocation3 + $0x198] sm:$0xff]  ;;  %v926_v53 = vpack.c.bf16 %v102_v47, %v96_v46  ;;  %v894_v54 = vpack.c.bf16 %v113_v49, %v107_v48  ;;  %v106_v55 = vld [vmem:[#allocation3 + $0x180] sm:$0xff]  ;;  %v112_v56 = vld [vmem:[#allocation3 + $0x1b0] sm:$0xff] }
  0x37   :  { %889 = vmatpush1.bf16.msra.mxu0 %v888_v36  ;;  %v108_v57 = vld [vmem:[#allocation3 + $0x190] sm:$0xff]  ;;  %v928_v58 = vpack.c.bf16 %v115_v51, %v109_v50  ;;  %v114_v59 = vld [vmem:[#allocation3 + $0x1c0] sm:$0xff]  ;;  %v119_v60 = vld [vmem:[#allocation3 + $0x1e8] sm:$0xff]  ;;  %v896_v0 = vpack.c.bf16 %v112_v56, %v106_v55 }
  0x38   :  { %923 = vmatpush1.bf16.msra.mxu1 %v922_v40  ;;  %891 = vmatprep.subr.bf16.mxu0 %v890_v41  ;;  %v125_v61 = vld [vmem:[#allocation3 + $0x218] sm:$0xff]  ;;  %v127_v63 = vld [vmem:[#allocation3 + $0x228] sm:$0xff]  ;;  %v930_v2 = vpack.c.bf16 %v114_v59, %v108_v57  ;;  %v118_v4 = vld [vmem:[#allocation3 + $0x1e0] sm:$0xff] }
  0x39   :  { %925 = vmatprep.subr.bf16.mxu1 %v924_v45  ;;  %v121_v62 = vld [vmem:[#allocation3 + $0x1f8] sm:$0xff]  ;;  %v898_v3 = vpack.c.bf16 %v125_v61, %v119_v60  ;;  %v124_v5 = vld [vmem:[#allocation3 + $0x210] sm:$0xff]  ;;  %v126_v8 = vld [vmem:[#allocation3 + $0x220] sm:$0xff] }
  0x3a   :  { %v120_v6 = vld [vmem:[#allocation3 + $0x1f0] sm:$0xff]  ;;  %v932_v7 = vpack.c.bf16 %v127_v63, %v121_v62  ;;  %v131_v9 = vld [vmem:[#allocation3 + $0x248] sm:$0xff]  ;;  %v137_v10 = vld [vmem:[#allocation3 + $0x278] sm:$0xff]  ;;  %v900_v13 = vpack.c.bf16 %v124_v5, %v118_v4 }
  0x3b   :  { %893 = vmatpush1.bf16.msra.mxu0 %v892_v52  ;;  %v133_v11 = vld [vmem:[#allocation3 + $0x258] sm:$0xff]  ;;  %v139_v12 = vld [vmem:[#allocation3 + $0x288] sm:$0xff]  ;;  %v934_v14 = vpack.c.bf16 %v126_v8, %v120_v6  ;;  %v902_v15 = vpack.c.bf16 %v137_v10, %v131_v9  ;;  %v130_v16 = vld [vmem:[#allocation3 + $0x240] sm:$0xff] }
  0x3c   :  { %927 = vmatpush1.bf16.msra.mxu1 %v926_v53  ;;  %895 = vmatprep.subr.bf16.mxu0 %v894_v54  ;;  %v136_v17 = vld [vmem:[#allocation3 + $0x270] sm:$0xff]  ;;  %v936_v19 = vpack.c.bf16 %v139_v12, %v133_v11  ;;  %v138_v20 = vld [vmem:[#allocation3 + $0x280] sm:$0xff]  ;;  %v143_v21 = vld [vmem:[#allocation3 + $0x2a8] sm:$0xff] }
  0x3d   :  { %929 = vmatprep.subr.bf16.mxu1 %v928_v58  ;;  %v132_v18 = vld [vmem:[#allocation3 + $0x250] sm:$0xff]  ;;  %v149_v22 = vld [vmem:[#allocation3 + $0x2d8] sm:$0x3f]  ;;  %v151_v24 = vld [vmem:[#allocation3 + $0x2e8] sm:$0x3f]  ;;  %v904_v25 = vpack.c.bf16 %v136_v17, %v130_v16 }
  0x3e   :  { %v145_v23 = vld [vmem:[#allocation3 + $0x2b8] sm:$0xff]  ;;  %vm1231_vm2 = vmpackc.low %vm158_vm0, %vm1158_vm1  ;;  %v938_v27 = vpack.c.bf16 %v138_v20, %v132_v18  ;;  %v906_v28 = vpack.c.bf16 %v149_v22, %v143_v21  ;;  %v142_v29 = vld [vmem:[#allocation3 + $0x2a0] sm:$0xff] }
  0x3f   :  { %897 = vmatpush1.bf16.msra.mxu0 %v896_v0  ;;  %v148_v30 = vld [vmem:[#allocation3 + $0x2d0] sm:$0x3f]  ;;  %v940_v32 = vpack.c.bf16 %v151_v24, %v145_v23  ;;  %v150_v33 = vld [vmem:[#allocation3 + $0x2e0] sm:$0x3f]  ;;  %v63_v34 = vld [vmem:[#allocation3 + $0x28] sm:$0xff] }
  0x40   :  { %931 = vmatpush1.bf16.msra.mxu1 %v930_v2  ;;  %899 = vmatprep.subr.bf16.mxu0 %v898_v3  ;;  %v144_v31 = vld [vmem:[#allocation3 + $0x2b0] sm:$0xff]  ;;  %v69_v35 = vld [vmem:[#allocation3 + $0x58] sm:$0xff]  ;;  %v909_v36 = vpack.c.bf16 %v148_v30, %v142_v29  ;;  %v62_v39 = vld [vmem:[#allocation3 + $0x20] sm:$0xff] }
  0x41   :  { %933 = vmatprep.subr.bf16.mxu1 %v932_v7  ;;  %v943_v37 = vpack.c.bf16 %v150_v33, %v144_v31  ;;  %v946_v38 = vpack.c.bf16 %v69_v35, %v63_v34  ;;  %v68_v40 = vld [vmem:[#allocation3 + $0x50] sm:$0xff]  ;;  %v75_v41 = vld [vmem:[#allocation3 + $0x88] sm:$0xff]  ;;  %v81_v42 = vld [vmem:[#allocation3 + $0xb8] sm:$0xff] }
  0x42   :  { %v1242_v43 = vld [vmem:[%s1292_s0] sm:$0x1]  ;;  %v74_v44 = vld [vmem:[#allocation3 + $0x80] sm:$0xff]  ;;  %v948_v45 = vpack.c.bf16 %v68_v40, %v62_v39  ;;  %v80_v46 = vld [vmem:[#allocation3 + $0xb0] sm:$0xff]  ;;  %v950_v49 = vpack.c.bf16 %v81_v42, %v75_v41 }
  0x43   :  { %901 = vmatpush1.bf16.msra.mxu0 %v900_v13  ;;  %v443_v47 = vld [vmem:[#allocation6 + $0x80] sm:$0xff]  ;;  %v444_v48 = vld [vmem:[#allocation6 + $0x88] sm:$0xff]  ;;  %v445_v53 = vld [vmem:[#allocation6 + $0x90] sm:$0xff]  ;;  %v952_v61 = vpack.c.bf16 %v80_v46, %v74_v44 }
  0x44   :  { %935 = vmatpush1.bf16.msra.mxu1 %v934_v14  ;;  %903 = vmatprep.subr.bf16.mxu0 %v902_v15  ;;  %v980_v50 = vpack.c.bf16 %v444_v48, %v443_v47  ;;  %v427_v51 = vld [vmem:[#allocation6] sm:$0xff]  ;;  %v428_v52 = vld [vmem:[#allocation6 + $0x8] sm:$0xff]  ;;  %v93_v55 = vld [vmem:[#allocation3 + $0x118] sm:$0xff] }
  0x45   :  { %937 = vmatprep.subr.bf16.mxu1 %v936_v19  ;;  %v87_v54 = vld [vmem:[#allocation3 + $0xe8] sm:$0xff]  ;;  %v982_v56 = vpack.c.bf16 %v428_v52, %v427_v51  ;;  %v446_v57 = vld [vmem:[#allocation6 + $0x98] sm:$0xff]  ;;  %v429_v59 = vld [vmem:[#allocation6 + $0x10] sm:$0xff] }
  0x46   :  { %v984_v58 = vpack.c.bf16 %v446_v57, %v445_v53  ;;  %v430_v60 = vld [vmem:[#allocation6 + $0x18] sm:$0xff]  ;;  %v447_v62 = vld [vmem:[#allocation6 + $0xa0] sm:$0xff]  ;;  %v448_v63 = vld [vmem:[#allocation6 + $0xa8] sm:$0xff]  ;;  %v954_v0 = vpack.c.bf16 %v93_v55, %v87_v54 }
  0x47   :  { %905 = vmatpush1.bf16.msra.mxu0 %v904_v25  ;;  %v86_v2 = vld [vmem:[#allocation3 + $0xe0] sm:$0xff]  ;;  %v92_v3 = vld [vmem:[#allocation3 + $0x110] sm:$0xff]  ;;  %v99_v4 = vld [vmem:[#allocation3 + $0x148] sm:$0xff]  ;;  %v986_v6 = vpack.c.bf16 %v430_v60, %v429_v59  ;;  %v988_v7 = vpack.c.bf16 %v448_v63, %v447_v62 }
  0x48   :  { %939 = vmatpush1.bf16.msra.mxu1 %v938_v27  ;;  %908 = vmatprep.subr.msk.bf16.mxu0 %vm1231_vm2, %v906_v28  ;;  %v105_v5 = vld [vmem:[#allocation3 + $0x178] sm:$0xff]  ;;  %v431_v8 = vld [vmem:[#allocation6 + $0x20] sm:$0xff]  ;;  %v432_v9 = vld [vmem:[#allocation6 + $0x28] sm:$0xff]  ;;  %v956_v10 = vpack.c.bf16 %v92_v3, %v86_v2 }
  0x49   :  { %942 = vmatprep.subr.msk.bf16.mxu1 %vm1231_vm2, %v940_v32  ;;  %v449_v11 = vld [vmem:[#allocation6 + $0xb0] sm:$0xff]  ;;  %v450_v12 = vld [vmem:[#allocation6 + $0xb8] sm:$0xff]  ;;  %v958_v13 = vpack.c.bf16 %v105_v5, %v99_v4  ;;  %v98_v14 = vld [vmem:[#allocation3 + $0x140] sm:$0xff]  ;;  %v990_v18 = vpack.c.bf16 %v432_v9, %v431_v8 }
  0x4a   :  { %v104_v15 = vld [vmem:[#allocation3 + $0x170] sm:$0xff]  ;;  %v111_v16 = vld [vmem:[#allocation3 + $0x1a8] sm:$0xff]  ;;  %v117_v17 = vld [vmem:[#allocation3 + $0x1d8] sm:$0xff]  ;;  %v992_v19 = vpack.c.bf16 %v450_v12, %v449_v11 }
  0x4b   :  { %911 = vmatpush1.bf16.msk.msra.mxu0 %vm1231_vm2, %v909_v36  ;;  %v433_v20 = vld [vmem:[#allocation6 + $0x30] sm:$0xff]  ;;  %v434_v21 = vld [vmem:[#allocation6 + $0x38] sm:$0xff]  ;;  %v960_v22 = vpack.c.bf16 %v104_v15, %v98_v14  ;;  %v451_v23 = vld [vmem:[#allocation6 + $0xc0] sm:$0xff]  ;;  %v962_v25 = vpack.c.bf16 %v117_v17, %v111_v16 }
  0x4c   :  { %945 = vmatpush1.bf16.msk.msra.mxu1 %vm1231_vm2, %v943_v37  ;;  %947 = vmatprep.subr.bf16.mxu0 %v946_v38  ;;  %v452_v24 = vld [vmem:[#allocation6 + $0xc8] sm:$0xff]  ;;  %v110_v27 = vld [vmem:[#allocation3 + $0x1a0] sm:$0xff]  ;;  %v116_v28 = vld [vmem:[#allocation3 + $0x1d0] sm:$0xff]  ;;  %v994_v31 = vpack.c.bf16 %v434_v21, %v433_v20 }
  0x4d   :  { %981 = vmatprep.subr.bf16.mxu1 %v980_v50  ;;  %v123_v29 = vld [vmem:[#allocation3 + $0x208] sm:$0xff]  ;;  %v129_v30 = vld [vmem:[#allocation3 + $0x238] sm:$0xff]  ;;  %v996_v32 = vpack.c.bf16 %v452_v24, %v451_v23  ;;  %v435_v33 = vld [vmem:[#allocation6 + $0x40] sm:$0xff]  ;;  %v964_v35 = vpack.c.bf16 %v116_v28, %v110_v27 }
  0x4e   :  { %749 = vmatmul.mubr.msk.f32.vlgmr.msra.gmra.mrb[0].mxu0 %vm154_vm3, %v1242_v43  ;;  %v436_v34 = vld [vmem:[#allocation6 + $0x48] sm:$0xff]  ;;  %v453_v36 = vld [vmem:[#allocation6 + $0xd0] sm:$0xff]  ;;  %v454_v37 = vld [vmem:[#allocation6 + $0xd8] sm:$0xff]  ;;  %v966_v38 = vpack.c.bf16 %v129_v30, %v123_v29 }
  0x4f   :  { %752 = vmatmul.mubr.msk.f32.vlgmr.msra.gmra.mrb[0].mxu1 %vm154_vm3, %v1242_v43  ;;  %949 = vmatpush1.bf16.msra.mxu0 %v948_v45  ;;  %v122_v39 = vld [vmem:[#allocation3 + $0x200] sm:$0xff]  ;;  %v128_v40 = vld [vmem:[#allocation3 + $0x230] sm:$0xff]  ;;  %v135_v41 = vld [vmem:[#allocation3 + $0x268] sm:$0xff]  ;;  %v998_v44 = vpack.c.bf16 %v436_v34, %v435_v33  ;;  %v1000_v45 = vpack.c.bf16 %v454_v37, %v453_v36 }
  0x50   :  { %951 = vmatprep.subr.bf16.mxu0 %v950_v49  ;;  %383 = vmatprep.mubr.f32.mxu0 %v1157_v1  ;;  %v141_v42 = vld [vmem:[#allocation3 + $0x298] sm:$0xff]  ;;  %v437_v46 = vld [vmem:[#allocation6 + $0x50] sm:$0xff]  ;;  %v968_v48 = vpack.c.bf16 %v128_v40, %v122_v39  ;;  %v455_v49 = vld [vmem:[#allocation6 + $0xe0] sm:$0xff] }
  0x51   :  { %983 = vmatpush3.bf16.msra.mxu1 %v982_v56  ;;  %v438_v47 = vld [vmem:[#allocation6 + $0x58] sm:$0xff]  ;;  %v456_v50 = vld [vmem:[#allocation6 + $0xe8] sm:$0xff]  ;;  %v970_v51 = vpack.c.bf16 %v141_v42, %v135_v41  ;;  %v134_v52 = vld [vmem:[#allocation3 + $0x260] sm:$0xff] }
  0x52   :  { %985 = vmatprep.subr.bf16.mxu1 %v984_v58  ;;  %v140_v53 = vld [vmem:[#allocation3 + $0x290] sm:$0xff]  ;;  %v147_v54 = vld [vmem:[#allocation3 + $0x2c8] sm:$0xff]  ;;  %v153_v55 = vld [vmem:[#allocation3 + $0x2f8] sm:$0x3f]  ;;  %v1002_v56 = vpack.c.bf16 %v438_v47, %v437_v46  ;;  %v1004_v57 = vpack.c.bf16 %v456_v50, %v455_v49 }
  0x53   :  { %953 = vmatpush1.bf16.msra.mxu0 %v952_v61  ;;  %v439_v58 = vld [vmem:[#allocation6 + $0x60] sm:$0xff]  ;;  %v440_v59 = vld [vmem:[#allocation6 + $0x68] sm:$0xff]  ;;  %v972_v60 = vpack.c.bf16 %v140_v53, %v134_v52  ;;  %v974_v61 = vpack.c.bf16 %v153_v55, %v147_v54  ;;  %v152_v63 = vld [vmem:[#allocation3 + $0x2f0] sm:$0x3f] }
  0x54   :  { %955 = vmatprep.subr.bf16.mxu0 %v954_v0  ;;  %v146_v62 = vld [vmem:[#allocation3 + $0x2c0] sm:$0xff]  ;;  %v1006_v0 = vpack.c.bf16 %v440_v59, %v439_v58  ;;  %v457_v3 = vld [vmem:[#allocation6 + $0xf0] sm:$0xff]  ;;  %v458_v4 = vld [vmem:[#allocation6 + $0xf8] sm:$0xff]  ;;  %v392_v58 = vlaneseq }
  0x55   :  { %987 = vmatpush3.bf16.msra.mxu1 %v986_v6  ;;  %v977_v2 = vpack.c.bf16 %v152_v63, %v146_v62  ;;  %v1008_v5 = vpack.c.bf16 %v458_v4, %v457_v3  ;;  %v441_v6 = vld [vmem:[#allocation6 + $0x70] sm:$0xff]  ;;  %v475_v9 = vld [vmem:[#allocation6 + $0x180] sm:$0xff]  ;;  %v478_v15 = vld [vmem:[#allocation6 + $0x198] sm:$0xff] }
  0x56   :  { %989 = vmatprep.subr.bf16.mxu1 %v988_v7  ;;  %v442_v7 = vld [vmem:[#allocation6 + $0x78] sm:$0xff]  ;;  %v459_v12 = vld [vmem:[#allocation6 + $0x100] sm:$0xff]  ;;  %v461_v17 = vld [vmem:[#allocation6 + $0x110] sm:$0xff]  ;;  %v393_v59 = vshrl.u32 %v392_v58, 7 }
  0x57   :  { %957 = vmatpush1.bf16.msra.mxu0 %v956_v10  ;;  %v1010_v8 = vpack.c.bf16 %v442_v7, %v441_v6  ;;  %v476_v10 = vld [vmem:[#allocation6 + $0x188] sm:$0xff]  ;;  %v479_v20 = vld [vmem:[#allocation6 + $0x1a0] sm:$0xff]  ;;  %v481_v27 = vld [vmem:[#allocation6 + $0x1b0] sm:$0xff] }
  0x58   :  { %959 = vmatprep.subr.bf16.mxu0 %v958_v13  ;;  %v1012_v11 = vpack.c.bf16 %v476_v10, %v475_v9  ;;  %v460_v13 = vld [vmem:[#allocation6 + $0x108] sm:$0xff]  ;;  %v463_v23 = vld [vmem:[#allocation6 + $0x120] sm:$0xff]  ;;  %v482_v28 = vld [vmem:[#allocation6 + $0x1b8] sm:$0xff] }
  0x59   :  { %991 = vmatpush3.bf16.msra.mxu1 %v990_v18  ;;  %v1014_v14 = vpack.c.bf16 %v460_v13, %v459_v12  ;;  %v462_v18 = vld [vmem:[#allocation6 + $0x118] sm:$0xff]  ;;  %v480_v21 = vld [vmem:[#allocation6 + $0x1a8] sm:$0xff]  ;;  %v1024_v29 = vpack.c.bf16 %v482_v28, %v481_v27  ;;  %v465_v30 = vld [vmem:[#allocation6 + $0x130] sm:$0xff] }
  0x5a   :  { %993 = vmatprep.subr.bf16.mxu1 %v992_v19  ;;  %v1018_v19 = vpack.c.bf16 %v462_v18, %v461_v17  ;;  %v464_v24 = vld [vmem:[#allocation6 + $0x128] sm:$0xff]  ;;  %v483_v33 = vld [vmem:[#allocation6 + $0x1c0] sm:$0xff]  ;;  %v485_v39 = vld [vmem:[#allocation6 + $0x1d0] sm:$0xff] }
  0x5b   :  { %961 = vmatpush1.bf16.msra.mxu0 %v960_v22  ;;  %v1020_v22 = vpack.c.bf16 %v480_v21, %v479_v20  ;;  %v484_v34 = vld [vmem:[#allocation6 + $0x1c8] sm:$0xff]  ;;  %v467_v36 = vld [vmem:[#allocation6 + $0x140] sm:$0xff]  ;;  %v486_v40 = vld [vmem:[#allocation6 + $0x1d8] sm:$0xff] }
  0x5c   :  { %963 = vmatprep.subr.bf16.mxu0 %v962_v25  ;;  %v1022_v25 = vpack.c.bf16 %v464_v24, %v463_v23  ;;  %v468_v37 = vld [vmem:[#allocation6 + $0x148] sm:$0xff]  ;;  %v1032_v41 = vpack.c.bf16 %v486_v40, %v485_v39  ;;  %v469_v42 = vld [vmem:[#allocation6 + $0x150] sm:$0xff]  ;;  %v487_v46 = vld [vmem:[#allocation6 + $0x1e0] sm:$0xff] }
  0x5d   :  { %995 = vmatpush3.bf16.msra.mxu1 %v994_v31  ;;  %v466_v31 = vld [vmem:[#allocation6 + $0x138] sm:$0xff]  ;;  %v488_v47 = vld [vmem:[#allocation6 + $0x1e8] sm:$0xff]  ;;  %v471_v49 = vld [vmem:[#allocation6 + $0x160] sm:$0xff] }
  0x5e   :  { %997 = vmatprep.subr.bf16.mxu1 %v996_v32  ;;  %v1026_v32 = vpack.c.bf16 %v466_v31, %v465_v30  ;;  %v472_v50 = vld [vmem:[#allocation6 + $0x168] sm:$0xff]  ;;  %v489_v52 = vld [vmem:[#allocation6 + $0x1f0] sm:$0xff]  ;;  %v490_v53 = vld [vmem:[#allocation6 + $0x1f8] sm:$0xff]  ;;  %v406_v30 = vsub.s32 3, %v393_v59  ;;  %v410_v31 = vsub.s32 4, %v393_v59 }
  0x5f   :  { %965 = vmatpush1.bf16.msra.mxu0 %v964_v35  ;;  %v1028_v35 = vpack.c.bf16 %v484_v34, %v483_v33  ;;  %v1040_v54 = vpack.c.bf16 %v490_v53, %v489_v52  ;;  %v473_v55 = vld [vmem:[#allocation6 + $0x170] sm:$0xff]  ;;  %v390_v62 = vld [vmem:[%s1294_s2] sm:$0x1f]  ;;  %v492_v6 = vld [vmem:[#allocation6 + $0x208] sm:$0xff] }
  0x60   :  { %967 = vmatprep.subr.bf16.mxu0 %v966_v38  ;;  %v1030_v38 = vpack.c.bf16 %v468_v37, %v467_v36  ;;  %v493_v13 = vld [vmem:[#allocation6 + $0x210] sm:$0xff]  ;;  %v499_v21 = vld [vmem:[#allocation6 + $0x240] sm:$0xff]  ;;  %v502_v24 = vld [vmem:[#allocation6 + $0x258] sm:$0xff]  ;;  %v407_v34 = vrot.slane %v390_v62, %v406_v30  ;;  %v411_v37 = vrot.slane %v390_v62, %v410_v31 }
  0x61   :  { %999 = vmatpush3.bf16.msra.mxu1 %v998_v44  ;;  %v470_v44 = vld [vmem:[#allocation6 + $0x158] sm:$0xff]  ;;  %v497_v18 = vld [vmem:[#allocation6 + $0x230] sm:$0xff]  ;;  %v503_v28 = vld [vmem:[#allocation6 + $0x260] sm:$0xff] }
  0x62   :  { %1001 = vmatprep.subr.bf16.mxu1 %v1000_v45  ;;  %v1034_v45 = vpack.c.bf16 %v470_v44, %v469_v42  ;;  %v506_v36 = vld [vmem:[#allocation6 + $0x278] sm:$0xff] }
  0x63   :  { %969 = vmatpush1.bf16.msra.mxu0 %v968_v48  ;;  %v1036_v48 = vpack.c.bf16 %v488_v47, %v487_v46 }
  0x64   :  { %971 = vmatprep.subr.bf16.mxu0 %v970_v51  ;;  %v1038_v51 = vpack.c.bf16 %v472_v50, %v471_v49 }
  0x65   :  { %1003 = vmatpush3.bf16.msra.mxu1 %v1002_v56  ;;  %v474_v56 = vld [vmem:[#allocation6 + $0x178] sm:$0xff] }
  0x66   :  { %1005 = vmatprep.subr.bf16.mxu1 %v1004_v57  ;;  %v1042_v57 = vpack.c.bf16 %v474_v56, %v473_v55 }
  0x67   :  { %973 = vmatpush1.bf16.msra.mxu0 %v972_v60  ;;  %v398_v60 = vsub.s32 1, %v393_v59 }
  0x68   :  { %976 = vmatprep.subr.msk.bf16.mxu0 %vm1231_vm2, %v974_v61  ;;  %v394_v61 = vsub.s32 0, %v393_v59 }
  0x69   :  { %1007 = vmatpush3.bf16.msra.mxu1 %v1006_v0  ;;  %v399_v63 = vrot.slane %v390_v62, %v398_v60  ;;  %v721_v60 = vld [vmem:[%s1297_s5] sm:$0x1] }
  0x6a   :  { %1009 = vmatprep.subr.bf16.mxu1 %v1008_v5  ;;  %v395_v0 = vrot.slane %v390_v62, %v394_v61  ;;  %v491_v5 = vld [vmem:[#allocation6 + $0x200] sm:$0xff] }
  0x6b   :  { %979 = vmatpush1.bf16.msk.msra.mxu0 %vm1231_vm2, %v977_v2  ;;  %v1045_v12 = vpack.c.bf16 %v492_v6, %v491_v5 }
  0x6c   :  { %1013 = vmatprep.subr.bf16.mxu0 %v1012_v11 }
  0x6d   :  { %1011 = vmatpush3.bf16.msra.mxu1 %v1010_v8 }
  0x6e   :  { %755 = vmatmul.mubr.msk.f32.vlgmr.msra.gmra.mrb[2].mxu0 %vm154_vm3, %v1242_v43  ;;  %1044 = vmatprep.subr.bf16.mxu1 %v1159_v26  ;;  %v477_v43 = vld [vmem:[#allocation6 + $0x190] sm:$0xff] }
  0x6f   :  { %1015 = vmatpush3.bf16.msra.mxu0 %v1014_v14  ;;  %v1016_v16 = vpack.c.bf16 %v478_v15, %v477_v43  ;;  %v494_v14 = vld [vmem:[#allocation6 + $0x218] sm:$0xff]  ;;  %v495_v15 = vld [vmem:[#allocation6 + $0x220] sm:$0xff] }
  0x70   :  { %v1048_v43 = vpack.c.bf16 %v494_v14, %v493_v13 }
  0x71   :  { %1017 = vmatprep.subr.bf16.mxu0 %v1016_v16  ;;  %v496_v16 = vld [vmem:[#allocation6 + $0x228] sm:$0xff] }
  0x72   :  { %v1051_v17 = vpack.c.bf16 %v496_v16, %v495_v15 }
  0x73   :  { %1019 = vmatpush3.bf16.msra.mxu0 %v1018_v19  ;;  %v498_v19 = vld [vmem:[#allocation6 + $0x238] sm:$0xff] }
  0x74   :  { %1021 = vmatprep.subr.bf16.mxu0 %v1020_v22  ;;  %v1054_v20 = vpack.c.bf16 %v498_v19, %v497_v18  ;;  %v500_v22 = vld [vmem:[#allocation6 + $0x248] sm:$0xff] }
  0x75   :  { %v1057_v23 = vpack.c.bf16 %v500_v22, %v499_v21 }
  0x77   :  { %1023 = vmatpush3.bf16.msra.mxu0 %v1022_v25  ;;  %v402_v25 = vsub.s32 2, %v393_v59 }
  0x78   :  { %1025 = vmatprep.subr.bf16.mxu0 %v1024_v29  ;;  %v504_v29 = vld [vmem:[#allocation6 + $0x268] sm:$0xff] }
  0x79   :  { %v1063_v33 = vpack.c.bf16 %v504_v29, %v503_v28 }
  0x7b   :  { %1027 = vmatpush3.bf16.msra.mxu0 %v1026_v32  ;;  %v403_v32 = vrot.slane %v390_v62, %v402_v25 }
  0x7c   :  { %1029 = vmatprep.subr.bf16.mxu0 %v1028_v35  ;;  %v505_v35 = vld [vmem:[#allocation6 + $0x270] sm:$0xff] }
  0x7d   :  { %v1066_v40 = vpack.c.bf16 %v506_v36, %v505_v35 }
  0x7f   :  { %1031 = vmatpush3.bf16.msra.mxu0 %v1030_v38 }
  0x80   :  { %1033 = vmatprep.subr.bf16.mxu0 %v1032_v41 }
  0x83   :  { %1035 = vmatpush3.bf16.msra.mxu0 %v1034_v45 }
  0x84   :  { %1037 = vmatprep.subr.bf16.mxu0 %v1036_v48 }
  0x87   :  { %1039 = vmatpush3.bf16.msra.mxu0 %v1038_v51 }
  0x88   :  { %1041 = vmatprep.subr.bf16.mxu0 %v1040_v54 }
  0x8b   :  { %1043 = vmatpush3.bf16.msra.mxu0 %v1042_v57 }
 0x121   :  { %v1263_v2 = vpop.f32.mrb[0].mxu0 }
 0x122   :  { %v314_v3 = vpop.f32.mrb[0].mxu1  ;;  %v245_v4 = vpop.f32.mrb[1].mxu0 }
 0x123   :  { %v418_v7 = vadd.f32 %v399_v63, %v314_v3  ;;  %v417_v8 = vadd.f32 %v395_v0, %v245_v4  ;;  %v316_v9 = vpop.f32.mrb[1].mxu1  ;;  %v727_v0 = vld [vmem:[#allocation2] sm:$0x1] }
 0x124   :  { %v419_v38 = vadd.f32 %v403_v32, %v316_v9 }
 0x125   :  { %v423_v10 = vmax.f32 %v418_v7, 0.0  ;;  %v422_v11 = vmax.f32 %v417_v8, 0.0 }
 0x126   :  { %v424_v46 = vmax.f32 %v419_v38, 0.0 }
 0x127   :  { %571 = vmatprep.mubr.f32.mxu1 %v423_v10 }
 0x128   :  { %572 = vmatmul.mubr.f32.vlgmr.msra.gmra.mrb[2].mxu1 %v422_v11 }
 0x129   :  { %1046 = vmatpush3.bf16.msra.mxu1 %v1045_v12  ;;  %875 = vmatprep.mubr.msk.f32.mxu1 %vm1160_vm4, %v1157_v1  ;;  %v501_v1 = vld [vmem:[#allocation6 + $0x250] sm:$0xff] }
 0x12a   :  { %1047 = vmatprep.subr.bf16.mxu1 %v1159_v26  ;;  %v1060_v27 = vpack.c.bf16 %v502_v24, %v501_v1 }
 0x12d   :  { %1049 = vmatpush3.bf16.msra.mxu1 %v1048_v43 }
 0x12e   :  { %1050 = vmatprep.subr.bf16.mxu1 %v1159_v26 }
 0x131   :  { %1052 = vmatpush3.bf16.msra.mxu1 %v1051_v17 }
 0x132   :  { %1053 = vmatprep.subr.bf16.mxu1 %v1159_v26 }
 0x135   :  { %1055 = vmatpush3.bf16.msra.mxu1 %v1054_v20 }
 0x136   :  { %1056 = vmatprep.subr.bf16.mxu1 %v1159_v26 }
 0x139   :  { %1058 = vmatpush3.bf16.msra.mxu1 %v1057_v23 }
 0x13a   :  { %1059 = vmatprep.subr.bf16.mxu1 %v1159_v26 }
 0x13d   :  { %1061 = vmatpush3.bf16.msra.mxu1 %v1060_v27 }
 0x13e   :  { %1062 = vmatprep.subr.bf16.mxu1 %v1159_v26 }
 0x141   :  { %1064 = vmatpush3.bf16.msra.mxu1 %v1063_v33  ;;  %v385_v39 = vpop.f32.mrb[2].mxu0 }
 0x142   :  { %v420_v41 = vadd.f32 %v407_v34, %v385_v39  ;;  %v387_v42 = vpop.f32.mrb[3].mxu0  ;;  %1065 = vmatprep.subr.bf16.mxu1 %v1159_v26  ;;  %v718_v26 = vld [vmem:[%s1296_s4] sm:$0x1]  ;;  %s1123_s4 = scalar_lea.vmem %s738_s6, 16 }
 0x143   :  { %v421_v44 = vadd.f32 %v411_v37, %v387_v42  ;;  %p1124_p2 = scmp.ne.s32.totalorder %s738_s6, %s1123_s4  ;;  %p1129_p4 = scmp.lt.s32.totalorder %s1127_s12, %s1123_s4 }
 0x144   :  { %v425_v45 = vmax.f32 %v420_v41, 0.0 }
 0x145   :  { %v426_v47 = vmax.f32 %v421_v44, 0.0  ;;  %1067 = vmatpush3.bf16.msra.mxu1 %v1066_v40  ;;  %p1130_p5 = por %p1129_p4, %p1128_p3 }
 0x146   :  { %641 = vmatprep.mubr.f32.mxu0 %v425_v45 }
 0x147   :  { %642 = vmatmul.mubr.f32.vlgmr.msra.gmra.mrb[4].mxu0 %v424_v46  ;;  %p1131_p6 = pnand %p1130_p5, %p1124_p2 }
 0x148   :  { %876 = vmatmul.mubr.f32.vlgmr.msra.gmra.mrb[4].mxu1 %v426_v47 }
 0x1fb   :  { %v788_v48 = vpop.f32.mrb[2].mxu1 }
 0x1fc   :  { %v789_v49 = vpop.f32.mrb[3].mxu1 }
 0x1fd   :  { %v790_v50 = vadd.f32 %v789_v49, %v788_v48 }
 0x21a   :  { %v823_v51 = vpop.f32.mrb[4].mxu0 }
 0x21b   :  { %v713_v52 = vpop.f32.mrb[4].mxu1  ;;  %v824_v53 = vpop.f32.mrb[5].mxu0 }
 0x21c   :  { %v825_v54 = vadd.f32 %v824_v53, %v823_v51  ;;  %v877_v55 = vpop.f32.mrb[5].mxu1 }
 0x21e   :  { %v644_v56 = vadd.f32 %v825_v54, %v790_v50 }
 0x220   :  { %v714_v57 = vadd.f32 %v713_v52, %v644_v56 }
 0x222   :  { %v717_v58 = vadd.f32 %v714_v57, %v1263_v2 }
 0x224   :  { %v719_v59 = vadd.f32 %v718_v26, %v717_v58 }
 0x226   :  { %v720_v61 = vmax.f32 %v719_v59, 0.0 }
 0x228   :  { %v722_v62 = vmul.f32 %v721_v60, %v720_v61 }
 0x22a   :  { %v724_v63 = vsel %vm723_vm5, %v722_v62, 0.0 }
 0x22b   :  { %725 = vadd.xlane.f32.xlu0 %v724_v63 }
 0x2b8   :  { %v726_v3 = vpop.xlane.xlu0 %725 }
 0x2b9   :  { %v728_v4 = vadd.f32 %v727_v0, %v726_v3 }
 0x2bb   :  { %730 = vst.msk [vmem:[#allocation8] sm:$0x1] %vm729_vm6, %v728_v4 }
 0x2bc   :  { %1134 = shalt.err (!%p1131_p6)
}
 0x2bd   :  { %s1135_s14 = scalar_lea.hbm %s1299_s7, 16 }
 0x2be   :  { %p1136_p7 = scmp.ne.s32.totalorder %s1299_s7, %s1135_s14  ;;  %p1139_p8 = scmp.lt.u32.totalorder %s1135_s14, %s1299_s7 }
 0x2c0   :  { %p1141_p9 = pnand %p1139_p8, %p1136_p7 }
 0x2c2   :  { %1144 = shalt.err (!%p1141_p9)
}
 0x2c3   :  { %740 = dma.vmem_to_hbm [thread:$0]  %s738_s6, 16, %s1299_s7, [#allocation5]  }
 0x2c4   :  { %1149 = dma.done.wait [#allocation5], 16  }
 0x2c5   :  { %1150 = vsyncadd [#allocation5], 4294967280 }
 0x2c6   :  { %744 = vsyncpa [#allocation4], 1 }
 0x2c7   :  { %745 = vsyncpa [#allocation7], 1 }
 0x2c8   :  { %746 = vsyncpa [#allocation5], 1 }

</bundles_post_ra>
